<compile_context>
chip_gen: v6e
topology: v6e:2x2x1
jax: 0.10.0
libtpu: 0.0.40
codegen_flags: <defaults>
</compile_context>

<pallas_src>
import functools

import jax
import jax.numpy as jnp
from jax.experimental import pallas as pl
from jax.experimental.pallas import tpu as pltpu

ALPHA = 0.75
GAMMA = 2.0

LANES = 128              # vreg lane width
MAX_BLOCK_ROWS = 4096    # (4096, 128) f32 = 2 MiB per input tile
VMEM_LIMIT_BYTES = 32 * 1024 * 1024


def _round_up(x, m):
    return ((x + m - 1) // m) * m


def _tensorcores_per_chip():
    """2 on v7x (dual TensorCore), 1 on v5e / v6e."""
    try:
        kind = jax.devices()[0].device_kind.lower().replace(" ", "")
    except Exception:
        return 1
    return 2 if ("v7" in kind or "tpu7" in kind) else 1


def _vfl_sum_xla(x, t, alpha, gamma):
    """Plain-XLA elementwise loss sum (used for the <128-elem ragged remainder)."""
    x = x.astype(jnp.float32)
    t = t.astype(jnp.float32)
    p = jax.nn.sigmoid(x)
    w = jnp.where(t > 0.0, t, alpha * p ** gamma)
    bce = jnp.maximum(x, 0.0) - x * t + jnp.log1p(jnp.exp(-jnp.abs(x)))
    return jnp.sum(bce * w)


def _vfl_kernel(x_ref, t_ref, out_ref, acc_ref, *,
                n_rows, alpha, gamma, steps_per_chunk, block_rows):
    """One (block_rows, 128) tile: elementwise loss + vector accumulation."""
    c = pl.program_id(0)           # chunk (one per TensorCore on v7x)
    s = pl.program_id(1)           # sequential step within the chunk

    @pl.when(s == 0)
    def _():
        acc_ref[...] = jnp.zeros_like(acc_ref)

    block_idx = c * steps_per_chunk + s

    def compute_accumulate(row_mask):
        # Entire chain stays inside ONE scf.if branch: no (block_rows, 128)
        # value crosses a pl.when boundary (which would force a ~MiB VMEM
        # spill/reload and break per-vreg compute->accumulate fusion).
        x = x_ref[...].astype(jnp.float32)
        t = t_ref[...].astype(jnp.float32)

        # Single shared transcendental: e = exp(-|x|).
        e = jnp.exp(-jnp.abs(x))
        # Approx reciprocal runs on the EUP (idle slot here); an exact divide
        # would burn several VALU ops/elem on the critical slot.
        inv = pl.reciprocal(1.0 + e, approx=True)
        p = jnp.where(x >= 0.0, inv, e * inv)            # stable sigmoid(x)
        # Stable BCE-with-logits: max(x, 0) - x*t + log1p(exp(-|x|))
        bce = jnp.maximum(x, 0.0) - x * t + jnp.log1p(e)

        if gamma == 2.0:                                 # trace-time fast path
            p_pow = p * p
        else:
            p_pow = p ** gamma
        loss = bce * jnp.where(t > 0.0, t, alpha * p_pow)

        if row_mask is not None:
            loss = jnp.where(row_mask, loss, 0.0)

        # Fold sublane groups into one vreg-shaped (8, 128) accumulator:
        # pure elementwise VPU adds, no per-step cross-lane (XLU) reduce.
        acc_ref[...] += loss.reshape(-1, 8, LANES).sum(axis=0)

    # Row-granular tail predicate/mask (lane remainder handled outside the
    # kernel): tiny int32 row counts, no absolute flat-index iota chain and
    # no int32 overflow for very large inputs.
    needs_mask = (block_idx + 1) * block_rows > n_rows

    # Steady state: no masking work at all.
    @pl.when(jnp.logical_not(needs_mask))
    def _():
        compute_accumulate(None)

    # Ragged tail (and any fully-redundant clamped block): mask invalid rows.
    @pl.when(needs_mask)
    def _():
        rem_rows = n_rows - block_idx * block_rows
        sub = jax.lax.broadcasted_iota(jnp.int32, (block_rows, LANES), 0)
        compute_accumulate(sub < rem_rows)

    # Write the per-chunk partial sums (still (8, 128), lane-dense) once.
    @pl.when(s == pl.num_programs(1) - 1)
    def _():
        out_ref[0] = acc_ref[...]


def varifocal_loss(logits, targets_q, alpha=ALPHA, gamma=GAMMA, num_chunks=None):
    """Mean-reduced varifocal loss; logits / targets_q same shape, any rank.

    Inputs may be bf16 (do not upcast at the wrapper boundary -- the kernel
    upcasts per-tile in VMEM and the op is HBM-bound on v5e/v6e).
    """
    assert logits.shape == targets_q.shape
    n = int(logits.size)

    if num_chunks is None:
        num_chunks = _tensorcores_per_chip()

    # Lane-dense (rows, 128) slab. When numel % 128 == 0 this is a free
    # reshape. Otherwise run the kernel on the aligned prefix and reduce the
    # <128-element remainder in plain XLA (no full-array jnp.pad copy).
    tail = None
    if n % LANES == 0:
        x2 = logits.reshape(-1, LANES)
        t2 = targets_q.reshape(-1, LANES)
    else:
        fx = jnp.ravel(logits)
        ft = jnp.ravel(targets_q)
        n_main = (n // LANES) * LANES
        if n_main == 0:   # fewer than 128 elements: not worth a kernel launch
            return _vfl_sum_xla(fx, ft, alpha, gamma) / jnp.float32(n)
        x2 = fx[:n_main].reshape(-1, LANES)
        t2 = ft[:n_main].reshape(-1, LANES)
        tail = (fx[n_main:], ft[n_main:])

    rows = x2.shape[0]
    block_rows = min(MAX_BLOCK_ROWS, _round_up(rows, 8))
    total_blocks = pl.cdiv(rows, block_rows)
    num_chunks = max(1, min(num_chunks, total_blocks))
    steps = pl.cdiv(total_blocks, num_chunks)

    if num_chunks == 1:
        # Single TensorCore: no clamp needed (s < total_blocks always) and no
        # redundant clamped-block DMAs.
        def row_block(c, s):
            return (s, 0)
    else:
        def row_block(c, s):
            # Clamp so a block never starts past the array; any redundant
            # clamped block is fully zeroed by the in-kernel row mask.
            return (jnp.minimum(c * steps + s, total_blocks - 1), 0)

    kernel = functools.partial(
        _vfl_kernel,
        n_rows=rows,
        alpha=float(alpha),
        gamma=float(gamma),
        steps_per_chunk=steps,
        block_rows=block_rows,
    )

    def _run(chunk_axis_semantics):
        return pl.pallas_call(
            kernel,
            out_shape=jax.ShapeDtypeStruct((num_chunks, 8, LANES), jnp.float32),
            grid_spec=pltpu.PrefetchScalarGridSpec(
                num_scalar_prefetch=0,
                grid=(num_chunks, steps),
                in_specs=[
                    pl.BlockSpec((block_rows, LANES), row_block),
                    pl.BlockSpec((block_rows, LANES), row_block),
                ],
                out_specs=pl.BlockSpec((1, 8, LANES), lambda c, s: (c, 0, 0)),
                scratch_shapes=[pltpu.VMEM((8, LANES), jnp.float32)],
            ),
            compiler_params=pltpu.CompilerParams(
                dimension_semantics=(chunk_axis_semantics, pltpu.ARBITRARY),
                vmem_limit_bytes=VMEM_LIMIT_BYTES,
            ),
        )(x2, t2)

    if num_chunks > 1:
        # v7x: genuinely shard the chunk axis across the two TensorCores so
        # both HBM/VPU streams stay busy; fall back to megacore 'parallel'
        # semantics if this toolchain rejects CORE_PARALLEL here.
        try:
            partials = _run(pltpu.CORE_PARALLEL)
        except Exception:
            partials = _run(pltpu.PARALLEL)
    else:
        partials = _run(pltpu.PARALLEL)

    # Final tiny cross-lane reduce + mean in XLA (num_chunks * 8 * 128 elems).
    total = jnp.sum(partials)
    if tail is not None:
        total = total + _vfl_sum_xla(tail[0], tail[1], alpha, gamma)
    return total / jnp.float32(n)


def _reference(logits, targets_q, alpha=ALPHA, gamma=GAMMA):
    x = logits.astype(jnp.float32)
    t = targets_q.astype(jnp.float32)
    p = jax.nn.sigmoid(x)
    w = jnp.where(t > 0.0, t, alpha * p ** gamma)
    bce = jnp.maximum(x, 0.0) - x * t + jnp.log1p(jnp.exp(-jnp.abs(x)))
    return jnp.mean(bce * w)


if __name__ == "__main__":
    key = jax.random.PRNGKey(0)
    k1, k2, k3, k4, k5, k6 = jax.random.split(key, 6)

    # Small NCHW dense-prediction shapes: batch=2, classes=4, 16x16 grid.
    B, C, H, W = 2, 4, 16, 16
    logits = jax.random.normal(k1, (B, C, H, W), dtype=jnp.float32) * 2.0
    # Quality targets in [0, 1], sparsified so most entries are 0 (background).
    q = jax.random.uniform(k2, (B, C, H, W), dtype=jnp.float32)
    mask = jax.random.uniform(k3, (B, C, H, W)) < 0.1
    targets_q = jnp.where(mask, q, 0.0)

    out = jax.block_until_ready(varifocal_loss(logits, targets_q))
    ref = _reference(logits, targets_q)
    # Tolerance loosened for the approx-reciprocal sigmoid (EUP vrcp).
    assert jnp.allclose(out, ref, rtol=2e-3, atol=1e-5), (out, ref)

    # Ragged-size sanity check: exercises the row-mask path + XLA tail path.
    logits_r = jax.random.normal(k4, (2, 5, 37), dtype=jnp.float32) * 2.0
    q_r = jax.random.uniform(k5, (2, 5, 37), dtype=jnp.float32)
    targets_r = jnp.where(jax.random.uniform(k6, (2, 5, 37)) < 0.1, q_r, 0.0)
    out_r = jax.block_until_ready(varifocal_loss(logits_r, targets_r))
    ref_r = _reference(logits_r, targets_r)
    assert jnp.allclose(out_r, ref_r, rtol=2e-3, atol=1e-5), (out_r, ref_r)

    print("KERNEL_OK")
</pallas_src>

<mosaic_0001>
module attributes {stable_mosaic.version = 11 : i64} {
  func.func @_vfl_kernel(%arg0: i32, %arg1: i32, %arg2: memref<16x128xf32, #tpu.memory_space<vmem>>, %arg3: memref<16x128xf32, #tpu.memory_space<vmem>>, %arg4: memref<1x8x128xf32, #tpu.memory_space<vmem>>, %arg5: memref<8x128xf32, #tpu.memory_space<vmem>>) attributes {dimension_semantics = [#tpu.dimension_semantics<parallel>, #tpu.dimension_semantics<arbitrary>], iteration_bounds = array<i64: 1, 1>, scalar_prefetch = 0 : i64, scratch_operands = 1 : i64, tpu.core_type = #tpu.core_type<tc>, window_params = [{transform_indices = @transform_0, window_bounds = array<i64: 16, 128>}, {transform_indices = @transform_1, window_bounds = array<i64: 16, 128>}, {transform_indices = @transform_2, window_bounds = array<i64: 1, 8, 128>}]} {
    %c0_i32 = arith.constant 0 : i32
    %0 = arith.cmpi eq, %arg1, %c0_i32 : i32
    %1 = arith.extui %0 : i1 to i32
    %c0_i32_0 = arith.constant 0 : i32
    %2 = arith.cmpi ne, %1, %c0_i32_0 : i32
    scf.if %2 {
      %cst = arith.constant 0.000000e+00 : f32
      %16 = vector.broadcast %cst : f32 to vector<8x128xf32>
      %c0 = arith.constant 0 : index
      %c0_7 = arith.constant 0 : index
      %17 = vector.load %arg5[%c0, %c0_7] : memref<8x128xf32, #tpu.memory_space<vmem>>, vector<8x128xf32>
      tpu.vector_store %arg5[%c0, %c0_7], %16 {strides = array<i32>} : memref<8x128xf32, #tpu.memory_space<vmem>>, vector<8x128xf32>,
    } else {
    }
    %c1_i32 = arith.constant 1 : i32
    %3 = arith.muli %arg0, %c1_i32 : i32
    %4 = arith.addi %3, %arg1 : i32
    %c1_i32_1 = arith.constant 1 : i32
    %5 = arith.addi %4, %c1_i32_1 : i32
    %c16_i32 = arith.constant 16 : i32
    %6 = arith.muli %5, %c16_i32 : i32
    %c16_i32_2 = arith.constant 16 : i32
    %7 = arith.cmpi sgt, %6, %c16_i32_2 : i32
    %true = arith.constant true
    %8 = arith.xori %7, %true : i1
    %9 = arith.extui %8 : i1 to i32
    %c0_i32_3 = arith.constant 0 : i32
    %10 = arith.cmpi ne, %9, %c0_i32_3 : i32
    scf.if %10 {
      %c0 = arith.constant 0 : index
      %c0_7 = arith.constant 0 : index
      %16 = vector.load %arg2[%c0, %c0_7] : memref<16x128xf32, #tpu.memory_space<vmem>>, vector<16x128xf32>
      %c0_8 = arith.constant 0 : index
      %c0_9 = arith.constant 0 : index
      %17 = vector.load %arg3[%c0_8, %c0_9] : memref<16x128xf32, #tpu.memory_space<vmem>>, vector<16x128xf32>
      %18 = math.absf %16 : vector<16x128xf32>
      %cst = arith.constant 0.000000e+00 : f32
      %19 = vector.broadcast %cst : f32 to vector<16x128xf32>
      %20 = arith.subf %19, %18 : vector<16x128xf32>
      %21 = math.exp %20 : vector<16x128xf32>
      %cst_10 = arith.constant 1.000000e+00 : f32
      %22 = vector.broadcast %cst_10 : f32 to vector<16x128xf32>
      %23 = arith.addf %22, %21 : vector<16x128xf32>
      %24 = tpu.reciprocal %23 {approx = true} : vector<16x128xf32> -> vector<16x128xf32>
      %cst_11 = arith.constant 0.000000e+00 : f32
      %25 = vector.broadcast %cst_11 : f32 to vector<16x128xf32>
      %26 = arith.cmpf oge, %16, %25 : vector<16x128xf32>
      %27 = arith.mulf %21, %24 : vector<16x128xf32>
      %28 = arith.select %26, %24, %27 : vector<16x128xi1>, vector<16x128xf32>
      %cst_12 = arith.constant 0.000000e+00 : f32
      %29 = vector.broadcast %cst_12 : f32 to vector<16x128xf32>
      %30 = arith.maximumf %16, %29 : vector<16x128xf32>
      %31 = arith.mulf %16, %17 : vector<16x128xf32>
      %32 = arith.subf %30, %31 : vector<16x128xf32>
      %33 = math.log1p %21 : vector<16x128xf32>
      %34 = arith.addf %32, %33 : vector<16x128xf32>
      %35 = arith.mulf %28, %28 : vector<16x128xf32>
      %cst_13 = arith.constant 0.000000e+00 : f32
      %36 = vector.broadcast %cst_13 : f32 to vector<16x128xf32>
      %37 = arith.cmpf ogt, %17, %36 : vector<16x128xf32>
      %cst_14 = arith.constant 7.500000e-01 : f32
      %38 = vector.broadcast %cst_14 : f32 to vector<16x128xf32>
      %39 = arith.mulf %38, %35 : vector<16x128xf32>
      %40 = arith.select %37, %17, %39 : vector<16x128xi1>, vector<16x128xf32>
      %41 = arith.mulf %34, %40 : vector<16x128xf32>
      %c0_15 = arith.constant 0 : index
      %c0_16 = arith.constant 0 : index
      %42 = vector.load %arg5[%c0_15, %c0_16] : memref<8x128xf32, #tpu.memory_space<vmem>>, vector<8x128xf32>
      %43 = vector.shape_cast %41 : vector<16x128xf32> to vector<2x8x128xf32>
      %cst_17 = arith.constant dense<0.000000e+00> : vector<8x128xf32>
      %44 = vector.multi_reduction <add>, %43, %cst_17 [0] : vector<2x8x128xf32> to vector<8x128xf32>
      %45 = arith.addf %42, %44 : vector<8x128xf32>
      %c0_18 = arith.constant 0 : index
      %c0_19 = arith.constant 0 : index
      %46 = vector.load %arg5[%c0_18, %c0_19] : memref<8x128xf32, #tpu.memory_space<vmem>>, vector<8x128xf32>
      tpu.vector_store %arg5[%c0_18, %c0_19], %45 {strides = array<i32>} : memref<8x128xf32, #tpu.memory_space<vmem>>, vector<8x128xf32>,
    } else {
    }
    %11 = arith.extui %7 : i1 to i32
    %c0_i32_4 = arith.constant 0 : i32
    %12 = arith.cmpi ne, %11, %c0_i32_4 : i32
    scf.if %12 {
      %c16_i32_7 = arith.constant 16 : i32
      %16 = arith.muli %4, %c16_i32_7 : i32
      %c16_i32_8 = arith.constant 16 : i32
      %17 = arith.subi %c16_i32_8, %16 : i32
      %18 = tpu.iota {dimensions = array<i32: 0>} : vector<16x128xi32>
      %19 = vector.broadcast %17 : i32 to vector<16x128xi32>
      %20 = arith.cmpi slt, %18, %19 : vector<16x128xi32>
      %c0 = arith.constant 0 : index
      %c0_9 = arith.constant 0 : index
      %21 = vector.load %arg2[%c0, %c0_9] : memref<16x128xf32, #tpu.memory_space<vmem>>, vector<16x128xf32>
      %c0_10 = arith.constant 0 : index
      %c0_11 = arith.constant 0 : index
      %22 = vector.load %arg3[%c0_10, %c0_11] : memref<16x128xf32, #tpu.memory_space<vmem>>, vector<16x128xf32>
      %23 = math.absf %21 : vector<16x128xf32>
      %cst = arith.constant 0.000000e+00 : f32
      %24 = vector.broadcast %cst : f32 to vector<16x128xf32>
      %25 = arith.subf %24, %23 : vector<16x128xf32>
      %26 = math.exp %25 : vector<16x128xf32>
      %cst_12 = arith.constant 1.000000e+00 : f32
      %27 = vector.broadcast %cst_12 : f32 to vector<16x128xf32>
      %28 = arith.addf %27, %26 : vector<16x128xf32>
      %29 = tpu.reciprocal %28 {approx = true} : vector<16x128xf32> -> vector<16x128xf32>
      %cst_13 = arith.constant 0.000000e+00 : f32
      %30 = vector.broadcast %cst_13 : f32 to vector<16x128xf32>
      %31 = arith.cmpf oge, %21, %30 : vector<16x128xf32>
      %32 = arith.mulf %26, %29 : vector<16x128xf32>
      %33 = arith.select %31, %29, %32 : vector<16x128xi1>, vector<16x128xf32>
      %cst_14 = arith.constant 0.000000e+00 : f32
      %34 = vector.broadcast %cst_14 : f32 to vector<16x128xf32>
      %35 = arith.maximumf %21, %34 : vector<16x128xf32>
      %36 = arith.mulf %21, %22 : vector<16x128xf32>
      %37 = arith.subf %35, %36 : vector<16x128xf32>
      %38 = math.log1p %26 : vector<16x128xf32>
      %39 = arith.addf %37, %38 : vector<16x128xf32>
      %40 = arith.mulf %33, %33 : vector<16x128xf32>
      %cst_15 = arith.constant 0.000000e+00 : f32
      %41 = vector.broadcast %cst_15 : f32 to vector<16x128xf32>
      %42 = arith.cmpf ogt, %22, %41 : vector<16x128xf32>
      %cst_16 = arith.constant 7.500000e-01 : f32
      %43 = vector.broadcast %cst_16 : f32 to vector<16x128xf32>
      %44 = arith.mulf %43, %40 : vector<16x128xf32>
      %45 = arith.select %42, %22, %44 : vector<16x128xi1>, vector<16x128xf32>
      %46 = arith.mulf %39, %45 : vector<16x128xf32>
      %cst_17 = arith.constant 0.000000e+00 : f32
      %47 = vector.broadcast %cst_17 : f32 to vector<16x128xf32>
      %48 = arith.select %20, %46, %47 : vector<16x128xi1>, vector<16x128xf32>
      %c0_18 = arith.constant 0 : index
      %c0_19 = arith.constant 0 : index
      %49 = vector.load %arg5[%c0_18, %c0_19] : memref<8x128xf32, #tpu.memory_space<vmem>>, vector<8x128xf32>
      %50 = vector.shape_cast %48 : vector<16x128xf32> to vector<2x8x128xf32>
      %cst_20 = arith.constant dense<0.000000e+00> : vector<8x128xf32>
      %51 = vector.multi_reduction <add>, %50, %cst_20 [0] : vector<2x8x128xf32> to vector<8x128xf32>
      %52 = arith.addf %49, %51 : vector<8x128xf32>
      %c0_21 = arith.constant 0 : index
      %c0_22 = arith.constant 0 : index
      %53 = vector.load %arg5[%c0_21, %c0_22] : memref<8x128xf32, #tpu.memory_space<vmem>>, vector<8x128xf32>
      tpu.vector_store %arg5[%c0_21, %c0_22], %52 {strides = array<i32>} : memref<8x128xf32, #tpu.memory_space<vmem>>, vector<8x128xf32>,
    } else {
    }
    %c0_i32_5 = arith.constant 0 : i32
    %13 = arith.cmpi eq, %arg1, %c0_i32_5 : i32
    %14 = arith.extui %13 : i1 to i32
    %c0_i32_6 = arith.constant 0 : i32
    %15 = arith.cmpi ne, %14, %c0_i32_6 : i32
    scf.if %15 {
      %c0 = arith.constant 0 : index
      %c0_7 = arith.constant 0 : index
      %16 = vector.load %arg5[%c0, %c0_7] : memref<8x128xf32, #tpu.memory_space<vmem>>, vector<8x128xf32>
      %c0_8 = arith.constant 0 : index
      %c0_9 = arith.constant 0 : index
      %c0_10 = arith.constant 0 : index
      %17 = vector.load %arg4[%c0_8, %c0_9, %c0_10] : memref<1x8x128xf32, #tpu.memory_space<vmem>>, vector<1x8x128xf32>
      %18 = vector.shape_cast %17 : vector<1x8x128xf32> to vector<8x128xf32>
      %19 = vector.shape_cast %16 : vector<8x128xf32> to vector<1x8x128xf32>
      tpu.vector_store %arg4[%c0_8, %c0_9, %c0_10], %19 {strides = array<i32>} : memref<1x8x128xf32, #tpu.memory_space<vmem>>, vector<1x8x128xf32>,
    } else {
    }
    return
  }
  func.func @transform_0(%arg0: i32, %arg1: i32) -> (i32, i32) {
    %c0_i32 = arith.constant 0 : i32
    %c0_i32_0 = arith.constant 0 : i32
    return %arg1, %c0_i32 : i32, i32
  }
  func.func @transform_1(%arg0: i32, %arg1: i32) -> (i32, i32) {
    %c0_i32 = arith.constant 0 : i32
    %c0_i32_0 = arith.constant 0 : i32
    return %arg1, %c0_i32 : i32, i32
  }
  func.func @transform_2(%arg0: i32, %arg1: i32) -> (i32, i32, i32) {
    %c0_i32 = arith.constant 0 : i32
    %c0_i32_0 = arith.constant 0 : i32
    %c0_i32_1 = arith.constant 0 : i32
    return %arg0, %c0_i32, %c0_i32_0 : i32, i32, i32
  }
}

</mosaic_0001>

<bundles_post_ra>
// kernel: tpu_custom_call.1
= control target key start
LH: loop header
LB: loop body
LE: loop exit
PB: predicated region body
PF: predicated region fallthrough
CT: control target
= control target key end

     0   :  { %7 = vsyncpa [#allocation4], 0  ;;  %s323_s0 = inlined_call_operand.hbm [shape: f32[16,128], index: 0, kind: input, shape index: {}]   ;;  %s324_s1 = inlined_call_operand.hbm [shape: f32[16,128], index: 1, kind: input, shape index: {}]   ;;  %s325_s2 = inlined_call_operand.hbm [shape: f32[1,8,128], index: 2, kind: output, shape index: {}]  }
   0x1   :  { %8 = vsyncpa [#allocation7], 0 }
   0x2   :  { %9 = vsyncpa [#allocation5], 0  ;;  %s294_s9 = smov [#allocation3]  }
   0x3   :  { %s15_s10 = sshll.u32 %s294_s9, 4  ;;  %s16_s10 = int_to_ptr.vmem [resolvable:$true] %s15_s10 }
   0x4   :  { %s236_s11 = scalar_lea.vmem %s16_s10, 256  ;;  %p241_p1 = scmp.lt.s32.totalorder %s16_s10, %s16_s10 }
   0x5   :  { %p237_p0 = scmp.ne.s32.totalorder %s16_s10, %s236_s11  ;;  %p242_p2 = scmp.lt.s32.totalorder %s236_s11, %s236_s11 }
   0x7   :  { %p243_p3 = por %p242_p2, %p241_p1 }
   0x9   :  { %p244_p4 = pnand %p243_p3, %p237_p0 }
   0xb   :  { %247 = shalt.err (!%p244_p4)
}
   0xc   :  { %s295_s12 = smov 128   ;;  %s296_s13 = smov 8  }
   0xd   :  { %21 = dma.hbm_to_vmem [thread:$0]  %s323_s0, 256, %s16_s10, [#allocation4], %s295_s12, %s295_s12, %s296_s13  }
   0xe   :  { %s297_s16 = smov [#allocation6]  }
   0xf   :  { %s27_s17 = sshll.u32 %s297_s16, 4  ;;  %s28_s17 = int_to_ptr.vmem [resolvable:$true] %s27_s17 }
  0x10   :  { %s256_s18 = scalar_lea.vmem %s28_s17, 256  ;;  %p261_p6 = scmp.lt.s32.totalorder %s28_s17, %s28_s17 }
  0x11   :  { %p257_p5 = scmp.ne.s32.totalorder %s28_s17, %s256_s18  ;;  %p262_p7 = scmp.lt.s32.totalorder %s256_s18, %s256_s18 }
  0x13   :  { %p263_p8 = por %p262_p7, %p261_p6 }
  0x15   :  { %p264_p9 = pnand %p263_p8, %p257_p5 }
  0x17   :  { %267 = shalt.err (!%p264_p9)
}
  0x18   :  { %33 = dma.hbm_to_vmem [thread:$0]  %s324_s1, 256, %s28_s17, [#allocation7], %s295_s12, %s295_s12, %s296_s13  }
  0x19   :  { %288 = dma.done.wait [#allocation4], 256  }
  0x1a   :  { %289 = vsyncadd [#allocation4], 4294967040 }
  0x1b   :  { %290 = dma.done.wait [#allocation7], 256  }
  0x1c   :  { %291 = vsyncadd [#allocation7], 4294967040  ;;  %v53_v0 = vld [vmem:[#allocation3] sm:$0xff]  ;;  %v54_v1 = vld [vmem:[#allocation3 + $0x8] sm:$0xff]  ;;  %s298_s0 = smov [#allocation8]  }
  0x1d   :  { %v57_v2 = vand.u32 2147483647, %v53_v0  ;;  %v58_v3 = vand.u32 2147483647, %v54_v1  ;;  %v55_v14 = vld [vmem:[#allocation6] sm:$0xff]  ;;  %v56_v15 = vld [vmem:[#allocation6 + $0x8] sm:$0xff] }
  0x1e   :  { %v75_v17 = vmax.f32 %v53_v0, 0.0  ;;  %v77_v18 = vmul.f32 %v55_v14, %v53_v0  ;;  %v76_v21 = vmax.f32 %v54_v1, 0.0  ;;  %v78_v22 = vmul.f32 %v56_v15, %v54_v1  ;;  %s201_s1 = sshll.u32 %s298_s0, 4  ;;  %s202_s1 = int_to_ptr.vmem [resolvable:$true] %s201_s1 }
  0x1f   :  { %v59_v4 = vsub.f32 0.0, %v57_v2  ;;  %v60_v5 = vsub.f32 0.0, %v58_v3  ;;  %vm69_vm0 = vcmp.ge.f32.partialorder %v53_v0, 0.0  ;;  %vm70_vm1 = vcmp.ge.f32.partialorder %v54_v1, 0.0  ;;  %s268_s21 = scalar_lea.vmem %s202_s1, 128  ;;  %p273_p11 = scmp.lt.s32.totalorder %s202_s1, %s202_s1 }
  0x20   :  { %v79_v30 = vsub.f32 %v75_v17, %v77_v18  ;;  %v80_v34 = vsub.f32 %v76_v21, %v78_v22  ;;  %vm103_vm4 = vcmp.gt.f32.partialorder %v55_v14, 0.0  ;;  %vm104_vm5 = vcmp.gt.f32.partialorder %v56_v15, 0.0  ;;  %p269_p10 = scmp.ne.s32.totalorder %s202_s1, %s268_s21  ;;  %p274_p12 = scmp.lt.s32.totalorder %s268_s21, %s268_s21 }
  0x21   :  { %v61_v6 = vmul.f32 1.442695, %v59_v4  ;;  %v63_v7 = vmul.f32 1.442695, %v60_v5 }
  0x22   :  { %p275_p13 = por %p274_p12, %p273_p11 }
  0x23   :  { %216 = vpow2.f32 %v61_v6 }
  0x24   :  { %218 = vpow2.f32 %v63_v7  ;;  %p276_p0 = pnand %p275_p13, %p269_p10 }
  0x30   :  { %v217_v8 = vpop.eup %216 }
  0x31   :  { %v219_v9 = vpop.eup %218  ;;  %v65_v10 = vadd.f32 1.0, %v217_v8  ;;  %v84_v12 = vmul.f32 -0.5, %v217_v8  ;;  %v87_v19 = vand.u32 2147483647, %v217_v8 }
  0x32   :  { %v66_v11 = vadd.f32 1.0, %v219_v9  ;;  %v93_v13 = vmul.f32 -0.5, %v219_v9  ;;  %v96_v23 = vand.u32 2147483647, %v219_v9 }
  0x33   :  { %220 = vrcp.f32 %v65_v10  ;;  %v85_v16 = vadd.f32 1.0, %v84_v12  ;;  %vm88_vm2 = vcmp.lt.f32.partialorder %v87_v19, 0.0004427343 }
  0x34   :  { %222 = vrcp.f32 %v66_v11  ;;  %v94_v20 = vadd.f32 1.0, %v93_v13  ;;  %vm97_vm3 = vcmp.lt.f32.partialorder %v96_v23, 0.0004427343 }
  0x35   :  { %224 = vlog2.f32 %v65_v10  ;;  %v86_v27 = vmul.f32 %v217_v8, %v85_v16 }
  0x36   :  { %226 = vlog2.f32 %v66_v11  ;;  %v95_v31 = vmul.f32 %v219_v9, %v94_v20 }
  0x40   :  { %v221_v24 = vpop.eup %220 }
  0x41   :  { %v223_v25 = vpop.eup %222  ;;  %v71_v26 = vmul.f32 %v221_v24, %v217_v8 }
  0x42   :  { %v225_v28 = vpop.eup %224  ;;  %v72_v29 = vmul.f32 %v223_v25, %v219_v9 }
  0x43   :  { %v227_v32 = vpop.eup %226  ;;  %v73_v33 = vsel %vm69_vm0, %v221_v24, %v71_v26  ;;  %v83_v35 = vmul.f32 0.6931472, %v225_v28 }
  0x44   :  { %v74_v36 = vsel %vm70_vm1, %v223_v25, %v72_v29  ;;  %v92_v37 = vmul.f32 0.6931472, %v227_v32  ;;  %v101_v38 = vmul.f32 %v73_v33, %v73_v33 }
  0x45   :  { %v89_v39 = vsel %vm88_vm2, %v86_v27, %v83_v35  ;;  %v102_v40 = vmul.f32 %v74_v36, %v74_v36 }
  0x46   :  { %v98_v41 = vsel %vm97_vm3, %v95_v31, %v92_v37  ;;  %v99_v42 = vadd.f32 %v89_v39, %v79_v30  ;;  %v105_v43 = vmul.f32 0.75, %v101_v38 }
  0x47   :  { %v100_v44 = vadd.f32 %v98_v41, %v80_v34  ;;  %v106_v45 = vmul.f32 0.75, %v102_v40 }
  0x48   :  { %v107_v46 = vsel %vm103_vm4, %v55_v14, %v105_v43 }
  0x49   :  { %v108_v47 = vsel %vm104_vm5, %v56_v15, %v106_v45  ;;  %v109_v48 = vmul.f32 %v107_v46, %v99_v42 }
  0x4a   :  { %v110_v49 = vmul.f32 %v108_v47, %v100_v44 }
  0x4c   :  { %v112_v50 = vadd.f32 %v110_v49, %v109_v48 }
  0x4e   :  { %194 = vst [vmem:[#allocation8] sm:$0xff] %v112_v50 }
  0x4f   :  { %279 = shalt.err (!%p276_p0)
}
  0x50   :  { %204 = dma.vmem_to_hbm [thread:$0]  %s202_s1, 128, %s325_s2, [#allocation5]  }
  0x51   :  { %292 = dma.done.wait [#allocation5], 128  }
  0x52   :  { %293 = vsyncadd [#allocation5], 4294967168 }
  0x53   :  { %208 = vsyncpa [#allocation4], 1 }
  0x54   :  { %209 = vsyncpa [#allocation7], 1 }
  0x55   :  { %210 = vsyncpa [#allocation5], 1 }

</bundles_post_ra>
